<compile_context>
chip_gen: v6e
topology: v6e:2x2x1
jax: 0.10.0
libtpu: 0.0.40
codegen_flags: <defaults>
</compile_context>

<pallas_src>
import jax
import jax.numpy as jnp
from jax import lax
from jax.experimental import pallas as pl
from jax.experimental.pallas import tpu as pltpu

LANE = 128
SUBLANE = 8
ALIGN = 16     # bf16 sublane tile is (16,128) -> keep slab segments 16-row aligned
V_PAD = 128    # vocab rows padded to a full lane width (lane-dense one-hot matmul)


def _round_up(x, m):
    return ((x + m - 1) // m) * m


# ----------------------------- parameter packing -----------------------------
def pack_params(params):
    """Pack all weights into one (rows, 128) bf16 slab -> a single DMA.

    Layout (row offsets returned; every segment starts on a 16-row boundary):
      proj    : (V_PAD, 128)  = embed @ W_ih, g-gate cols pre-scaled by 2, rows>=V zero
      w_hh_t  : (H,     128)  g-gate cols pre-scaled by 2
      b_gates : (16,    128)  row 0 valid (= b_ih + b_hh), g-gate cols pre-scaled by 2
      w_out_t : (H,     128)  cols >= L zero-padded
      b_out   : (16,    128)  row 0 valid, cols >= L zero-padded
    """
    V, E = params["embed"].shape
    H = params["w_hh_t"].shape[0]
    L = params["w_out_t"].shape[1]
    # shape guards: this packing assumes a single-vreg-wide gate row + small vocab
    assert 4 * H <= LANE and E <= LANE and L <= LANE and V <= V_PAD, \
        "config too large for the single-vreg slab layout"

    def scale_g(a):
        # tanh(x) = 2*sigmoid(2x) - 1  ->  pre-scale the g-gate columns by 2
        return a.at[:, 2 * H:3 * H].multiply(2.0)

    # input projection folded into the embedding at pack time (dropout inactive)
    proj = scale_g(params["embed"].astype(jnp.float32)
                   @ params["w_ih_t"].astype(jnp.float32))          # (V, 4H)
    whh = scale_g(params["w_hh_t"].astype(jnp.float32))             # (H, 4H)
    bg = scale_g(params["b_gates"].astype(jnp.float32))             # (1, 4H)
    wout = params["w_out_t"].astype(jnp.float32)                    # (H, L)
    bo = params["b_out"].astype(jnp.float32)                        # (1, L)

    def blk(a, rows):
        rows = _round_up(rows, ALIGN)
        return jnp.pad(a, ((0, rows - a.shape[0]), (0, LANE - a.shape[1])))

    pieces = [blk(proj, V_PAD), blk(whh, H), blk(bg, 1), blk(wout, H), blk(bo, 1)]
    offs, r = [], 0
    for p in pieces:
        offs.append(r)
        r += p.shape[0]
    slab = jnp.concatenate(pieces, axis=0).astype(jnp.bfloat16)     # (224, 128)
    return slab, tuple(offs)


# ----------------------------- Pallas kernel --------------------------------
def make_lstm_classifier_kernel(T, B_pad, H, offs):
    o_proj, o_whh, o_bg, o_wout, o_bo = offs

    def kernel(tok_ref, slab_ref, o_ref):
        # --- unpack the single bf16 parameter slab (static, tile-aligned slices) ---
        proj = slab_ref[o_proj:o_proj + V_PAD, :]       # (V_PAD, 4H) rows>=V are 0
        whh = slab_ref[o_whh:o_whh + H, :]               # (H, 4H)
        bg = slab_ref[o_bg:o_bg + 1, :]                  # (1, 4H)
        wout = slab_ref[o_wout:o_wout + H, :]            # (H, 128) cols>=L are 0
        bo = slab_ref[o_bo:o_bo + 1, :]                  # (1, 128)

        # --- fused embedding gather (one-hot matmul against the precomputed
        #     embed@W_ih projection) + bias, hoisted off the serial recurrence ---
        toks = tok_ref[...]                                              # (T*B_pad, 1) int32
        onehot = (toks == lax.broadcasted_iota(
            jnp.int32, (T * B_pad, V_PAD), 1)).astype(jnp.bfloat16)      # (T*B_pad, V_PAD)
        xw = jnp.dot(onehot, proj,
                     preferred_element_type=jnp.float32) \
            + bg.astype(jnp.float32)                                     # (T*B_pad, 4H) f32

        # --- serial LSTM recurrence, fully unrolled (T is static & tiny) ---
        h = jnp.zeros((B_pad, H), jnp.float32)
        c = jnp.zeros((B_pad, H), jnp.float32)
        hmax = None
        for t in range(T):
            gates = xw[t * B_pad:(t + 1) * B_pad, :] + jnp.dot(
                h.astype(jnp.bfloat16), whh,
                preferred_element_type=jnp.float32)                      # (B_pad, 4H) f32
            # ONE full-vreg EUP launch; gate order (i, f, g, o), g-cols pre-scaled by 2
            sig = jax.nn.sigmoid(gates)
            i_g = sig[:, 0 * H:1 * H]
            f_g = sig[:, 1 * H:2 * H]
            g_g = 2.0 * sig[:, 2 * H:3 * H] - 1.0        # tanh via pre-scaled sigmoid
            o_g = sig[:, 3 * H:4 * H]
            c = f_g * c + i_g * g_g
            h = o_g * jnp.tanh(c)
            hmax = h if hmax is None else jnp.maximum(hmax, h)           # torch.max(output,0)[0]

        # --- output Linear, lane-padded to 128 for an unmasked store ---
        o_ref[...] = jnp.dot(hmax.astype(jnp.bfloat16), wout,
                             preferred_element_type=jnp.float32) + bo.astype(jnp.float32)

    return kernel


# --------------------------------- wrapper -----------------------------------
def classifier_forward(tokens, slab, offs, *, H, L):
    """tokens: (T, B) int32 -> logits (B, L)."""
    T, B = tokens.shape
    B_pad = _round_up(max(B, 1), SUBLANE)

    # pad batch to sublane width, flatten time*batch for the one-hot matmul
    tok_pad = jnp.pad(tokens.astype(jnp.int32), ((0, 0), (0, B_pad - B)))
    tok_pad = tok_pad.reshape(T * B_pad, 1)

    kernel = make_lstm_classifier_kernel(T, B_pad, H, offs)
    vmem = pl.BlockSpec(memory_space=pltpu.MemorySpace.VMEM)
    out = pl.pallas_call(
        kernel,
        out_shape=jax.ShapeDtypeStruct((B_pad, LANE), jnp.float32),
        in_specs=[vmem, vmem],
        out_specs=vmem,
    )(tok_pad, slab)
    return out[:B, :L]


# ----------------------------- pure-JAX reference ----------------------------
def classifier_ref(tokens, params):
    x_emb = jnp.take(params["embed"], tokens, axis=0).astype(jnp.float32)
    H = params["w_hh_t"].shape[0]

    def step(carry, x_t):
        h, c = carry
        gates = x_t @ params["w_ih_t"] + h @ params["w_hh_t"] + params["b_gates"]
        i_g = jax.nn.sigmoid(gates[:, 0 * H:1 * H])
        f_g = jax.nn.sigmoid(gates[:, 1 * H:2 * H])
        g_g = jnp.tanh(gates[:, 2 * H:3 * H])
        o_g = jax.nn.sigmoid(gates[:, 3 * H:4 * H])
        c_new = f_g * c + i_g * g_g
        h_new = o_g * jnp.tanh(c_new)
        return (h_new, c_new), h_new

    B = tokens.shape[1]
    h0 = jnp.zeros((B, H), jnp.float32)
    c0 = jnp.zeros((B, H), jnp.float32)
    _, hs = lax.scan(step, (h0, c0), x_emb)             # (T, B, H)
    hmax = jnp.max(hs, axis=0)                          # torch.max(output, 0)[0]
    return hmax @ params["w_out_t"] + params["b_out"]


# --------------------------------- main --------------------------------------
if __name__ == "__main__":
    VOCAB, EMB, HID, LABEL = 50, 16, 32, 4
    T, B = 8, 2

    key = jax.random.PRNGKey(0)
    ks = jax.random.split(key, 8)

    k_init = 1.0 / jnp.sqrt(HID)   # PyTorch LSTM/Linear default uniform init scale
    params = {
        "embed":   jax.random.normal(ks[0], (VOCAB, EMB), jnp.float32) * 0.1,
        # LSTM weights, stored transposed; PyTorch gate order (i, f, g, o)
        "w_ih_t":  jax.random.uniform(ks[1], (EMB, 4 * HID), jnp.float32,
                                      -k_init, k_init),
        "w_hh_t":  jax.random.uniform(ks[2], (HID, 4 * HID), jnp.float32,
                                      -k_init, k_init),
        "b_gates": (jax.random.uniform(ks[3], (1, 4 * HID), jnp.float32,
                                       -k_init, k_init)
                    + jax.random.uniform(ks[4], (1, 4 * HID), jnp.float32,
                                         -k_init, k_init)),      # b_ih + b_hh
        # self.out : Linear(HID, LABEL), stored transposed
        "w_out_t": jax.random.uniform(ks[5], (HID, LABEL), jnp.float32,
                                      -k_init, k_init),
        "b_out":   jax.random.uniform(ks[6], (1, LABEL), jnp.float32,
                                      -k_init, k_init),
    }

    tokens = jax.random.randint(ks[7], (T, B), 0, VOCAB, dtype=jnp.int32)

    slab, offs = pack_params(params)   # param-only; done once per weight update

    logits = jax.block_until_ready(
        classifier_forward(tokens, slab, offs, H=HID, L=LABEL))
    ref = jax.block_until_ready(classifier_ref(tokens, params))

    assert logits.shape == (B, LABEL)
    # bf16 weights / MXU passes with f32 accumulation: expected error ~1e-3
    assert jnp.allclose(logits, ref, atol=2e-2, rtol=2e-2), (logits, ref)
    print("KERNEL_OK")
</pallas_src>

<mosaic_0001>
module attributes {stable_mosaic.version = 11 : i64} {
  func.func @kernel(%arg0: memref<64x1xi32, #tpu.memory_space<vmem>>, %arg1: memref<224x128xbf16, #tpu.memory_space<vmem>>, %arg2: memref<8x128xf32, #tpu.memory_space<vmem>>) attributes {dimension_semantics = [], scalar_prefetch = 0 : i64, scratch_operands = 0 : i64, tpu.core_type = #tpu.core_type<tc>} {
    %c0 = arith.constant 0 : index
    %c0_0 = arith.constant 0 : index
    %0 = vector.load %arg1[%c0, %c0_0] : memref<224x128xbf16, #tpu.memory_space<vmem>>, vector<128x128xbf16>
    %c128 = arith.constant 128 : index
    %c0_1 = arith.constant 0 : index
    %1 = vector.load %arg1[%c128, %c0_1] : memref<224x128xbf16, #tpu.memory_space<vmem>>, vector<32x128xbf16>
    %c160 = arith.constant 160 : index
    %c0_2 = arith.constant 0 : index
    %2 = vector.load %arg1[%c160, %c0_2] : memref<224x128xbf16, #tpu.memory_space<vmem>>, vector<1x128xbf16>
    %c176 = arith.constant 176 : index
    %c0_3 = arith.constant 0 : index
    %3 = vector.load %arg1[%c176, %c0_3] : memref<224x128xbf16, #tpu.memory_space<vmem>>, vector<32x128xbf16>
    %c208 = arith.constant 208 : index
    %c0_4 = arith.constant 0 : index
    %4 = vector.load %arg1[%c208, %c0_4] : memref<224x128xbf16, #tpu.memory_space<vmem>>, vector<1x128xbf16>
    %c0_5 = arith.constant 0 : index
    %c0_6 = arith.constant 0 : index
    %5 = vector.load %arg0[%c0_5, %c0_6] : memref<64x1xi32, #tpu.memory_space<vmem>>, vector<64x1xi32>
    %6 = tpu.iota {dimensions = array<i32: 1>} : vector<64x128xi32>
    %7 = vector.broadcast %5 : vector<64x1xi32> to vector<64x128xi32>
    %8 = arith.cmpi eq, %7, %6 : vector<64x128xi32>
    %9 = arith.extui %8 : vector<64x128xi1> to vector<64x128xi32>
    %10 = arith.sitofp %9 : vector<64x128xi32> to vector<64x128xf32>
    %11 = arith.truncf %10 : vector<64x128xf32> to vector<64x128xbf16>
    %cst = arith.constant dense<0.000000e+00> : vector<64x128xf32>
    %12 = tpu.matmul %11, %0, %cst {dimension_numbers = #tpu.dot_dimension_numbers<[1], [0], [0], [1], [0, 0, 1, 1], [], []>} : vector<64x128xbf16>, vector<128x128xbf16>, vector<64x128xf32> -> vector<64x128xf32>
    %13 = arith.extf %2 : vector<1x128xbf16> to vector<1x128xf32>
    %14 = vector.broadcast %13 : vector<1x128xf32> to vector<64x128xf32>
    %15 = arith.addf %12, %14 : vector<64x128xf32>
    %cst_7 = arith.constant 0.000000e+00 : f32
    %16 = vector.broadcast %cst_7 : f32 to vector<8x32xf32>
    %cst_8 = arith.constant 0.000000e+00 : f32
    %17 = vector.broadcast %cst_8 : f32 to vector<8x32xf32>
    %18 = vector.extract_strided_slice %15 {offsets = [0, 0], sizes = [8, 128], strides = [1, 1]} : vector<64x128xf32> to vector<8x128xf32>
    %19 = arith.truncf %16 : vector<8x32xf32> to vector<8x32xbf16>
    %cst_9 = arith.constant dense<0.000000e+00> : vector<8x128xf32>
    %20 = tpu.matmul %19, %1, %cst_9 {dimension_numbers = #tpu.dot_dimension_numbers<[1], [0], [0], [1], [0, 0, 1, 1], [], []>} : vector<8x32xbf16>, vector<32x128xbf16>, vector<8x128xf32> -> vector<8x128xf32>
    %21 = arith.addf %18, %20 : vector<8x128xf32>
    %22 = arith.negf %21 : vector<8x128xf32>
    %23 = math.exp %22 : vector<8x128xf32>
    %cst_10 = arith.constant 1.000000e+00 : f32
    %24 = vector.broadcast %cst_10 : f32 to vector<8x128xf32>
    %25 = arith.addf %24, %23 : vector<8x128xf32>
    %26 = arith.divf %24, %25 : vector<8x128xf32>
    %27 = vector.extract_strided_slice %26 {offsets = [0, 0], sizes = [8, 32], strides = [1, 1]} : vector<8x128xf32> to vector<8x32xf32>
    %28 = vector.extract_strided_slice %26 {offsets = [0, 32], sizes = [8, 32], strides = [1, 1]} : vector<8x128xf32> to vector<8x32xf32>
    %29 = vector.extract_strided_slice %26 {offsets = [0, 64], sizes = [8, 32], strides = [1, 1]} : vector<8x128xf32> to vector<8x32xf32>
    %cst_11 = arith.constant 2.000000e+00 : f32
    %30 = vector.broadcast %cst_11 : f32 to vector<8x32xf32>
    %31 = arith.mulf %30, %29 : vector<8x32xf32>
    %cst_12 = arith.constant 1.000000e+00 : f32
    %32 = vector.broadcast %cst_12 : f32 to vector<8x32xf32>
    %33 = arith.subf %31, %32 : vector<8x32xf32>
    %34 = vector.extract_strided_slice %26 {offsets = [0, 96], sizes = [8, 32], strides = [1, 1]} : vector<8x128xf32> to vector<8x32xf32>
    %35 = arith.mulf %28, %17 : vector<8x32xf32>
    %36 = arith.mulf %27, %33 : vector<8x32xf32>
    %37 = arith.addf %35, %36 : vector<8x32xf32>
    %38 = math.tanh %37 : vector<8x32xf32>
    %39 = arith.mulf %34, %38 : vector<8x32xf32>
    %40 = vector.extract_strided_slice %15 {offsets = [8, 0], sizes = [8, 128], strides = [1, 1]} : vector<64x128xf32> to vector<8x128xf32>
    %41 = arith.truncf %39 : vector<8x32xf32> to vector<8x32xbf16>
    %cst_13 = arith.constant dense<0.000000e+00> : vector<8x128xf32>
    %42 = tpu.matmul %41, %1, %cst_13 {dimension_numbers = #tpu.dot_dimension_numbers<[1], [0], [0], [1], [0, 0, 1, 1], [], []>} : vector<8x32xbf16>, vector<32x128xbf16>, vector<8x128xf32> -> vector<8x128xf32>
    %43 = arith.addf %40, %42 : vector<8x128xf32>
    %44 = arith.negf %43 : vector<8x128xf32>
    %45 = math.exp %44 : vector<8x128xf32>
    %cst_14 = arith.constant 1.000000e+00 : f32
    %46 = vector.broadcast %cst_14 : f32 to vector<8x128xf32>
    %47 = arith.addf %46, %45 : vector<8x128xf32>
    %48 = arith.divf %46, %47 : vector<8x128xf32>
    %49 = vector.extract_strided_slice %48 {offsets = [0, 0], sizes = [8, 32], strides = [1, 1]} : vector<8x128xf32> to vector<8x32xf32>
    %50 = vector.extract_strided_slice %48 {offsets = [0, 32], sizes = [8, 32], strides = [1, 1]} : vector<8x128xf32> to vector<8x32xf32>
    %51 = vector.extract_strided_slice %48 {offsets = [0, 64], sizes = [8, 32], strides = [1, 1]} : vector<8x128xf32> to vector<8x32xf32>
    %cst_15 = arith.constant 2.000000e+00 : f32
    %52 = vector.broadcast %cst_15 : f32 to vector<8x32xf32>
    %53 = arith.mulf %52, %51 : vector<8x32xf32>
    %cst_16 = arith.constant 1.000000e+00 : f32
    %54 = vector.broadcast %cst_16 : f32 to vector<8x32xf32>
    %55 = arith.subf %53, %54 : vector<8x32xf32>
    %56 = vector.extract_strided_slice %48 {offsets = [0, 96], sizes = [8, 32], strides = [1, 1]} : vector<8x128xf32> to vector<8x32xf32>
    %57 = arith.mulf %50, %37 : vector<8x32xf32>
    %58 = arith.mulf %49, %55 : vector<8x32xf32>
    %59 = arith.addf %57, %58 : vector<8x32xf32>
    %60 = math.tanh %59 : vector<8x32xf32>
    %61 = arith.mulf %56, %60 : vector<8x32xf32>
    %62 = arith.maximumf %39, %61 : vector<8x32xf32>
    %63 = vector.extract_strided_slice %15 {offsets = [16, 0], sizes = [8, 128], strides = [1, 1]} : vector<64x128xf32> to vector<8x128xf32>
    %64 = arith.truncf %61 : vector<8x32xf32> to vector<8x32xbf16>
    %cst_17 = arith.constant dense<0.000000e+00> : vector<8x128xf32>
    %65 = tpu.matmul %64, %1, %cst_17 {dimension_numbers = #tpu.dot_dimension_numbers<[1], [0], [0], [1], [0, 0, 1, 1], [], []>} : vector<8x32xbf16>, vector<32x128xbf16>, vector<8x128xf32> -> vector<8x128xf32>
    %66 = arith.addf %63, %65 : vector<8x128xf32>
    %67 = arith.negf %66 : vector<8x128xf32>
    %68 = math.exp %67 : vector<8x128xf32>
    %cst_18 = arith.constant 1.000000e+00 : f32
    %69 = vector.broadcast %cst_18 : f32 to vector<8x128xf32>
    %70 = arith.addf %69, %68 : vector<8x128xf32>
    %71 = arith.divf %69, %70 : vector<8x128xf32>
    %72 = vector.extract_strided_slice %71 {offsets = [0, 0], sizes = [8, 32], strides = [1, 1]} : vector<8x128xf32> to vector<8x32xf32>
    %73 = vector.extract_strided_slice %71 {offsets = [0, 32], sizes = [8, 32], strides = [1, 1]} : vector<8x128xf32> to vector<8x32xf32>
    %74 = vector.extract_strided_slice %71 {offsets = [0, 64], sizes = [8, 32], strides = [1, 1]} : vector<8x128xf32> to vector<8x32xf32>
    %cst_19 = arith.constant 2.000000e+00 : f32
    %75 = vector.broadcast %cst_19 : f32 to vector<8x32xf32>
    %76 = arith.mulf %75, %74 : vector<8x32xf32>
    %cst_20 = arith.constant 1.000000e+00 : f32
    %77 = vector.broadcast %cst_20 : f32 to vector<8x32xf32>
    %78 = arith.subf %76, %77 : vector<8x32xf32>
    %79 = vector.extract_strided_slice %71 {offsets = [0, 96], sizes = [8, 32], strides = [1, 1]} : vector<8x128xf32> to vector<8x32xf32>
    %80 = arith.mulf %73, %59 : vector<8x32xf32>
    %81 = arith.mulf %72, %78 : vector<8x32xf32>
    %82 = arith.addf %80, %81 : vector<8x32xf32>
    %83 = math.tanh %82 : vector<8x32xf32>
    %84 = arith.mulf %79, %83 : vector<8x32xf32>
    %85 = arith.maximumf %62, %84 : vector<8x32xf32>
    %86 = vector.extract_strided_slice %15 {offsets = [24, 0], sizes = [8, 128], strides = [1, 1]} : vector<64x128xf32> to vector<8x128xf32>
    %87 = arith.truncf %84 : vector<8x32xf32> to vector<8x32xbf16>
    %cst_21 = arith.constant dense<0.000000e+00> : vector<8x128xf32>
    %88 = tpu.matmul %87, %1, %cst_21 {dimension_numbers = #tpu.dot_dimension_numbers<[1], [0], [0], [1], [0, 0, 1, 1], [], []>} : vector<8x32xbf16>, vector<32x128xbf16>, vector<8x128xf32> -> vector<8x128xf32>
    %89 = arith.addf %86, %88 : vector<8x128xf32>
    %90 = arith.negf %89 : vector<8x128xf32>
    %91 = math.exp %90 : vector<8x128xf32>
    %cst_22 = arith.constant 1.000000e+00 : f32
    %92 = vector.broadcast %cst_22 : f32 to vector<8x128xf32>
    %93 = arith.addf %92, %91 : vector<8x128xf32>
    %94 = arith.divf %92, %93 : vector<8x128xf32>
    %95 = vector.extract_strided_slice %94 {offsets = [0, 0], sizes = [8, 32], strides = [1, 1]} : vector<8x128xf32> to vector<8x32xf32>
    %96 = vector.extract_strided_slice %94 {offsets = [0, 32], sizes = [8, 32], strides = [1, 1]} : vector<8x128xf32> to vector<8x32xf32>
    %97 = vector.extract_strided_slice %94 {offsets = [0, 64], sizes = [8, 32], strides = [1, 1]} : vector<8x128xf32> to vector<8x32xf32>
    %cst_23 = arith.constant 2.000000e+00 : f32
    %98 = vector.broadcast %cst_23 : f32 to vector<8x32xf32>
    %99 = arith.mulf %98, %97 : vector<8x32xf32>
    %cst_24 = arith.constant 1.000000e+00 : f32
    %100 = vector.broadcast %cst_24 : f32 to vector<8x32xf32>
    %101 = arith.subf %99, %100 : vector<8x32xf32>
    %102 = vector.extract_strided_slice %94 {offsets = [0, 96], sizes = [8, 32], strides = [1, 1]} : vector<8x128xf32> to vector<8x32xf32>
    %103 = arith.mulf %96, %82 : vector<8x32xf32>
    %104 = arith.mulf %95, %101 : vector<8x32xf32>
    %105 = arith.addf %103, %104 : vector<8x32xf32>
    %106 = math.tanh %105 : vector<8x32xf32>
    %107 = arith.mulf %102, %106 : vector<8x32xf32>
    %108 = arith.maximumf %85, %107 : vector<8x32xf32>
    %109 = vector.extract_strided_slice %15 {offsets = [32, 0], sizes = [8, 128], strides = [1, 1]} : vector<64x128xf32> to vector<8x128xf32>
    %110 = arith.truncf %107 : vector<8x32xf32> to vector<8x32xbf16>
    %cst_25 = arith.constant dense<0.000000e+00> : vector<8x128xf32>
    %111 = tpu.matmul %110, %1, %cst_25 {dimension_numbers = #tpu.dot_dimension_numbers<[1], [0], [0], [1], [0, 0, 1, 1], [], []>} : vector<8x32xbf16>, vector<32x128xbf16>, vector<8x128xf32> -> vector<8x128xf32>
    %112 = arith.addf %109, %111 : vector<8x128xf32>
    %113 = arith.negf %112 : vector<8x128xf32>
    %114 = math.exp %113 : vector<8x128xf32>
    %cst_26 = arith.constant 1.000000e+00 : f32
    %115 = vector.broadcast %cst_26 : f32 to vector<8x128xf32>
    %116 = arith.addf %115, %114 : vector<8x128xf32>
    %117 = arith.divf %115, %116 : vector<8x128xf32>
    %118 = vector.extract_strided_slice %117 {offsets = [0, 0], sizes = [8, 32], strides = [1, 1]} : vector<8x128xf32> to vector<8x32xf32>
    %119 = vector.extract_strided_slice %117 {offsets = [0, 32], sizes = [8, 32], strides = [1, 1]} : vector<8x128xf32> to vector<8x32xf32>
    %120 = vector.extract_strided_slice %117 {offsets = [0, 64], sizes = [8, 32], strides = [1, 1]} : vector<8x128xf32> to vector<8x32xf32>
    %cst_27 = arith.constant 2.000000e+00 : f32
    %121 = vector.broadcast %cst_27 : f32 to vector<8x32xf32>
    %122 = arith.mulf %121, %120 : vector<8x32xf32>
    %cst_28 = arith.constant 1.000000e+00 : f32
    %123 = vector.broadcast %cst_28 : f32 to vector<8x32xf32>
    %124 = arith.subf %122, %123 : vector<8x32xf32>
    %125 = vector.extract_strided_slice %117 {offsets = [0, 96], sizes = [8, 32], strides = [1, 1]} : vector<8x128xf32> to vector<8x32xf32>
    %126 = arith.mulf %119, %105 : vector<8x32xf32>
    %127 = arith.mulf %118, %124 : vector<8x32xf32>
    %128 = arith.addf %126, %127 : vector<8x32xf32>
    %129 = math.tanh %128 : vector<8x32xf32>
    %130 = arith.mulf %125, %129 : vector<8x32xf32>
    %131 = arith.maximumf %108, %130 : vector<8x32xf32>
    %132 = vector.extract_strided_slice %15 {offsets = [40, 0], sizes = [8, 128], strides = [1, 1]} : vector<64x128xf32> to vector<8x128xf32>
    %133 = arith.truncf %130 : vector<8x32xf32> to vector<8x32xbf16>
    %cst_29 = arith.constant dense<0.000000e+00> : vector<8x128xf32>
    %134 = tpu.matmul %133, %1, %cst_29 {dimension_numbers = #tpu.dot_dimension_numbers<[1], [0], [0], [1], [0, 0, 1, 1], [], []>} : vector<8x32xbf16>, vector<32x128xbf16>, vector<8x128xf32> -> vector<8x128xf32>
    %135 = arith.addf %132, %134 : vector<8x128xf32>
    %136 = arith.negf %135 : vector<8x128xf32>
    %137 = math.exp %136 : vector<8x128xf32>
    %cst_30 = arith.constant 1.000000e+00 : f32
    %138 = vector.broadcast %cst_30 : f32 to vector<8x128xf32>
    %139 = arith.addf %138, %137 : vector<8x128xf32>
    %140 = arith.divf %138, %139 : vector<8x128xf32>
    %141 = vector.extract_strided_slice %140 {offsets = [0, 0], sizes = [8, 32], strides = [1, 1]} : vector<8x128xf32> to vector<8x32xf32>
    %142 = vector.extract_strided_slice %140 {offsets = [0, 32], sizes = [8, 32], strides = [1, 1]} : vector<8x128xf32> to vector<8x32xf32>
    %143 = vector.extract_strided_slice %140 {offsets = [0, 64], sizes = [8, 32], strides = [1, 1]} : vector<8x128xf32> to vector<8x32xf32>
    %cst_31 = arith.constant 2.000000e+00 : f32
    %144 = vector.broadcast %cst_31 : f32 to vector<8x32xf32>
    %145 = arith.mulf %144, %143 : vector<8x32xf32>
    %cst_32 = arith.constant 1.000000e+00 : f32
    %146 = vector.broadcast %cst_32 : f32 to vector<8x32xf32>
    %147 = arith.subf %145, %146 : vector<8x32xf32>
    %148 = vector.extract_strided_slice %140 {offsets = [0, 96], sizes = [8, 32], strides = [1, 1]} : vector<8x128xf32> to vector<8x32xf32>
    %149 = arith.mulf %142, %128 : vector<8x32xf32>
    %150 = arith.mulf %141, %147 : vector<8x32xf32>
    %151 = arith.addf %149, %150 : vector<8x32xf32>
    %152 = math.tanh %151 : vector<8x32xf32>
    %153 = arith.mulf %148, %152 : vector<8x32xf32>
    %154 = arith.maximumf %131, %153 : vector<8x32xf32>
    %155 = vector.extract_strided_slice %15 {offsets = [48, 0], sizes = [8, 128], strides = [1, 1]} : vector<64x128xf32> to vector<8x128xf32>
    %156 = arith.truncf %153 : vector<8x32xf32> to vector<8x32xbf16>
    %cst_33 = arith.constant dense<0.000000e+00> : vector<8x128xf32>
    %157 = tpu.matmul %156, %1, %cst_33 {dimension_numbers = #tpu.dot_dimension_numbers<[1], [0], [0], [1], [0, 0, 1, 1], [], []>} : vector<8x32xbf16>, vector<32x128xbf16>, vector<8x128xf32> -> vector<8x128xf32>
    %158 = arith.addf %155, %157 : vector<8x128xf32>
    %159 = arith.negf %158 : vector<8x128xf32>
    %160 = math.exp %159 : vector<8x128xf32>
    %cst_34 = arith.constant 1.000000e+00 : f32
    %161 = vector.broadcast %cst_34 : f32 to vector<8x128xf32>
    %162 = arith.addf %161, %160 : vector<8x128xf32>
    %163 = arith.divf %161, %162 : vector<8x128xf32>
    %164 = vector.extract_strided_slice %163 {offsets = [0, 0], sizes = [8, 32], strides = [1, 1]} : vector<8x128xf32> to vector<8x32xf32>
    %165 = vector.extract_strided_slice %163 {offsets = [0, 32], sizes = [8, 32], strides = [1, 1]} : vector<8x128xf32> to vector<8x32xf32>
    %166 = vector.extract_strided_slice %163 {offsets = [0, 64], sizes = [8, 32], strides = [1, 1]} : vector<8x128xf32> to vector<8x32xf32>
    %cst_35 = arith.constant 2.000000e+00 : f32
    %167 = vector.broadcast %cst_35 : f32 to vector<8x32xf32>
    %168 = arith.mulf %167, %166 : vector<8x32xf32>
    %cst_36 = arith.constant 1.000000e+00 : f32
    %169 = vector.broadcast %cst_36 : f32 to vector<8x32xf32>
    %170 = arith.subf %168, %169 : vector<8x32xf32>
    %171 = vector.extract_strided_slice %163 {offsets = [0, 96], sizes = [8, 32], strides = [1, 1]} : vector<8x128xf32> to vector<8x32xf32>
    %172 = arith.mulf %165, %151 : vector<8x32xf32>
    %173 = arith.mulf %164, %170 : vector<8x32xf32>
    %174 = arith.addf %172, %173 : vector<8x32xf32>
    %175 = math.tanh %174 : vector<8x32xf32>
    %176 = arith.mulf %171, %175 : vector<8x32xf32>
    %177 = arith.maximumf %154, %176 : vector<8x32xf32>
    %178 = vector.extract_strided_slice %15 {offsets = [56, 0], sizes = [8, 128], strides = [1, 1]} : vector<64x128xf32> to vector<8x128xf32>
    %179 = arith.truncf %176 : vector<8x32xf32> to vector<8x32xbf16>
    %cst_37 = arith.constant dense<0.000000e+00> : vector<8x128xf32>
    %180 = tpu.matmul %179, %1, %cst_37 {dimension_numbers = #tpu.dot_dimension_numbers<[1], [0], [0], [1], [0, 0, 1, 1], [], []>} : vector<8x32xbf16>, vector<32x128xbf16>, vector<8x128xf32> -> vector<8x128xf32>
    %181 = arith.addf %178, %180 : vector<8x128xf32>
    %182 = arith.negf %181 : vector<8x128xf32>
    %183 = math.exp %182 : vector<8x128xf32>
    %cst_38 = arith.constant 1.000000e+00 : f32
    %184 = vector.broadcast %cst_38 : f32 to vector<8x128xf32>
    %185 = arith.addf %184, %183 : vector<8x128xf32>
    %186 = arith.divf %184, %185 : vector<8x128xf32>
    %187 = vector.extract_strided_slice %186 {offsets = [0, 0], sizes = [8, 32], strides = [1, 1]} : vector<8x128xf32> to vector<8x32xf32>
    %188 = vector.extract_strided_slice %186 {offsets = [0, 32], sizes = [8, 32], strides = [1, 1]} : vector<8x128xf32> to vector<8x32xf32>
    %189 = vector.extract_strided_slice %186 {offsets = [0, 64], sizes = [8, 32], strides = [1, 1]} : vector<8x128xf32> to vector<8x32xf32>
    %cst_39 = arith.constant 2.000000e+00 : f32
    %190 = vector.broadcast %cst_39 : f32 to vector<8x32xf32>
    %191 = arith.mulf %190, %189 : vector<8x32xf32>
    %cst_40 = arith.constant 1.000000e+00 : f32
    %192 = vector.broadcast %cst_40 : f32 to vector<8x32xf32>
    %193 = arith.subf %191, %192 : vector<8x32xf32>
    %194 = vector.extract_strided_slice %186 {offsets = [0, 96], sizes = [8, 32], strides = [1, 1]} : vector<8x128xf32> to vector<8x32xf32>
    %195 = arith.mulf %188, %174 : vector<8x32xf32>
    %196 = arith.mulf %187, %193 : vector<8x32xf32>
    %197 = arith.addf %195, %196 : vector<8x32xf32>
    %198 = math.tanh %197 : vector<8x32xf32>
    %199 = arith.mulf %194, %198 : vector<8x32xf32>
    %200 = arith.maximumf %177, %199 : vector<8x32xf32>
    %201 = arith.truncf %200 : vector<8x32xf32> to vector<8x32xbf16>
    %cst_41 = arith.constant dense<0.000000e+00> : vector<8x128xf32>
    %202 = tpu.matmul %201, %3, %cst_41 {dimension_numbers = #tpu.dot_dimension_numbers<[1], [0], [0], [1], [0, 0, 1, 1], [], []>} : vector<8x32xbf16>, vector<32x128xbf16>, vector<8x128xf32> -> vector<8x128xf32>
    %203 = arith.extf %4 : vector<1x128xbf16> to vector<1x128xf32>
    %204 = vector.broadcast %203 : vector<1x128xf32> to vector<8x128xf32>
    %205 = arith.addf %202, %204 : vector<8x128xf32>
    %c0_42 = arith.constant 0 : index
    %c0_43 = arith.constant 0 : index
    %206 = vector.load %arg2[%c0_42, %c0_43] : memref<8x128xf32, #tpu.memory_space<vmem>>, vector<8x128xf32>
    tpu.vector_store %arg2[%c0_42, %c0_43], %205 {strides = array<i32>} : memref<8x128xf32, #tpu.memory_space<vmem>>, vector<8x128xf32>,
    return
  }
}

</mosaic_0001>

<bundles_post_ra>
// kernel: tpu_custom_call.1
= control target key start
LH: loop header
LB: loop body
LE: loop exit
PB: predicated region body
PF: predicated region fallthrough
CT: control target
= control target key end

     0   :  { %7 = vsyncpa [#allocation3], 0  ;;  %s1421_s0 = inlined_call_operand.vmem [shape: s32[64,1], index: 0, kind: input, shape index: {}]   ;;  %s1422_s1 = inlined_call_operand.hbm [shape: bf16[224,128], index: 1, kind: input, shape index: {}]   ;;  %s1423_s2 = inlined_call_operand.hbm [shape: f32[8,128], index: 2, kind: output, shape index: {}]  }
   0x1   :  { %8 = vsyncpa [#allocation4], 0  ;;  %s1215_s9 = smov [#allocation2]  }
   0x2   :  { %s16_s10 = sshll.u32 %s1215_s9, 4  ;;  %s17_s10 = int_to_ptr.vmem [resolvable:$true] %s16_s10 }
   0x3   :  { %s1179_s11 = scalar_lea.vmem %s17_s10, 1792  ;;  %p1184_p1 = scmp.lt.s32.totalorder %s17_s10, %s17_s10 }
   0x4   :  { %p1180_p0 = scmp.ne.s32.totalorder %s17_s10, %s1179_s11  ;;  %p1185_p2 = scmp.lt.s32.totalorder %s1179_s11, %s1179_s11 }
   0x6   :  { %p1186_p3 = por %p1185_p2, %p1184_p1 }
   0x8   :  { %p1187_p4 = pnand %p1186_p3, %p1180_p0 }
   0xa   :  { %1190 = shalt.err (!%p1187_p4)
}
   0xb   :  { %s1216_s12 = smov 64   ;;  %s1217_s13 = smov 4  }
   0xc   :  { %22 = dma.hbm_to_vmem [thread:$0]  %s1422_s1, 1792, %s17_s10, [#allocation3], %s1216_s12, %s1216_s12, %s1217_s13  }
   0xd   :  { %1211 = dma.done.wait [#allocation3], 1792  }
   0xe   :  { %1212 = vsyncadd [#allocation3], 4294965504  ;;  %v1218_v0 = vmov 0   ;;  %v1219_v1 = vmov 0.0   ;;  %v55_v2 = vld [vmem:[%s1421_s0 + $0x10] sm:$0xff]  ;;  %v53_v3 = vld [vmem:[%s1421_s0] sm:$0xff]  ;;  %v61_v16 = vlaneseq }
   0xf   :  { %1110 = vset.pattern.permute.xlu1 %v1218_v0  ;;  %1109 = vset.pattern.permute.xlu0 %v1218_v0  ;;  %v56_v4 = vld [vmem:[%s1421_s0 + $0x18] sm:$0xff]  ;;  %v54_v5 = vld [vmem:[%s1421_s0 + $0x8] sm:$0xff]  ;;  %vm1220_vm0 = vmmov 0   ;;  %v1112_v7 = vld [vmem:[#allocation2 + $0x30] sm:$0xff]   ;;  %v1221_v22 = vmov 1.0|1.0  }
  0x10   :  { %1028 = vmatprep.subr.bf16.mxu1 %v1219_v1  ;;  %70 = vperm.xlu1 %1110, %v55_v2   ;;  %v1111_v6 = vld [vmem:[#allocation2 + $0x38] sm:$0xff]   ;;  %v1113_v8 = vld [vmem:[#allocation2 + $0x28] sm:$0xff]   ;;  %v1262_v10 = vld [vmem:[#allocation2 + $0x40] sm:$0xff]   ;;  %v1274_v19 = vand.u32 127, %v61_v16  ;;  %v1286_v27 = vshrl.u32 %v61_v16, 7  ;;  %s1222_s23 = smov 32  }
  0x11   :  { %64 = vperm.xlu0 %1109, %v53_v3   ;;  %1032 = vmatprep.mubr.msk.bf16.mxu1 %vm1220_vm0, %v1219_v1  ;;  %v1259_v9 = vld [vmem:[#allocation2 + $0x48] sm:$0xff]   ;;  %v1114_v11 = vld [vmem:[#allocation2 + $0x20] sm:$0xff]   ;;  %v1115_v12 = vld [vmem:[#allocation2 + $0x18] sm:$0xff]   ;;  %vm245_vm7 = vcmask 261120  }
  0x12   :  { %1004 = vmatprep.subr.bf16.mxu0 %v1111_v6  ;;  %1029 = vmatpush3.bf16.msra.mxu1 %v1259_v9  ;;  %v1116_v13 = vld [vmem:[#allocation2 + $0x10] sm:$0xff]   ;;  %v1118_v14 = vld [vmem:[#allocation2 + $0x8] sm:$0xff]   ;;  %v1120_v15 = vld [vmem:[#allocation2] sm:$0xff]   ;;  %v118_v30 = vsub.s32 0, %v1286_v27 }
  0x13   :  { %1005 = vmatpush3.bf16.msra.mxu0 %v1111_v6  ;;  %1030 = vmatprep.subr.bf16.mxu1 %v1219_v1  ;;  %v47_v28 = vld [vmem:[#allocation2 + $0x50] sm:$0x1] }
  0x14   :  { %73 = vperm.xlu1 %1110, %v56_v4   ;;  %1006 = vmatprep.subr.bf16.mxu0 %v1112_v7  ;;  %v115_v29 = vunpack.c.l.bf16 %v47_v28 }
  0x15   :  { %67 = vperm.xlu0 %1109, %v54_v5  }
  0x16   :  { %1031 = vmatpush3.bf16.msra.mxu1 %v1262_v10  ;;  %v1293_v32 = vrot.slane %v115_v29, %v118_v30 }
  0x17   :  { %1007 = vmatpush3.bf16.msra.mxu0 %v1112_v7  ;;  %1036 = vmatprep.subr.bf16.mxu1 %v1219_v1 }
  0x18   :  { %1008 = vmatprep.subr.bf16.mxu0 %v1113_v8 }
  0x19   :  { %1033 = vmatmul.mubr.bf16.vlgmr.msra.gmra.mxu1 %v1218_v0 }
  0x1a   :  { %1037 = vmatpush3.bf16.msra.mxu1 %v1259_v9  ;;  %1040 = vmatprep.mubr.msk.bf16.mxu1 %vm1220_vm0, %v1219_v1 }
  0x1b   :  { %1009 = vmatpush3.bf16.msra.mxu0 %v1113_v8  ;;  %1038 = vmatprep.subr.bf16.mxu1 %v1219_v1 }
  0x1c   :  { %1010 = vmatprep.subr.bf16.mxu0 %v1114_v11 }
  0x1e   :  { %1039 = vmatpush3.bf16.msra.mxu1 %v1262_v10 }
  0x1f   :  { %1011 = vmatpush3.bf16.msra.mxu0 %v1114_v11  ;;  %1044 = vmatprep.subr.bf16.mxu1 %v1219_v1 }
  0x20   :  { %1012 = vmatprep.subr.bf16.mxu0 %v1115_v12 }
  0x23   :  { %1013 = vmatpush3.bf16.msra.mxu0 %v1115_v12 }
  0x24   :  { %1014 = vmatprep.subr.bf16.mxu0 %v1116_v13 }
  0x27   :  { %1015 = vmatpush3.bf16.msra.mxu0 %v1116_v13 }
  0x28   :  { %1016 = vmatprep.subr.bf16.mxu0 %v1118_v14 }
  0x2b   :  { %1017 = vmatpush3.bf16.msra.mxu0 %v1118_v14 }
  0x2c   :  { %1018 = vmatprep.subr.bf16.mxu0 %v1120_v15 }
  0x2f   :  { %1019 = vmatpush3.bf16.msra.mxu0 %v1120_v15 }
  0x30   :  { %1068 = vmatprep.subr.bf16.mxu0 %v1219_v1 }
  0x8b   :  { %v71_v17 = vpop.permute.xlu1 %70 }
  0x8c   :  { %v65_v18 = vpop.permute.xlu0 %64  ;;  %vm89_vm1 = vcmp.eq.s32.totalorder %v71_v17, %v1274_v19 }
  0x8d   :  { %vm87_vm4 = vcmp.eq.s32.totalorder %v65_v18, %v1274_v19 }
  0x8f   :  { %v74_v20 = vpop.permute.xlu1 %73 }
  0x90   :  { %v68_v21 = vpop.permute.xlu0 %67  ;;  %vm90_vm2 = vcmp.eq.s32.totalorder %v74_v20, %v1274_v19 }
  0x91   :  { %vm88_vm3 = vcmp.eq.s32.totalorder %v68_v21, %v1274_v19  ;;  %vm931_vm5 = vmpackc.low %vm90_vm2, %vm89_vm1 }
  0x92   :  { %vm929_vm6 = vmpackc.low %vm88_vm3, %vm87_vm4 }
  0x93   :  { %1020 = vmatprep.mubr.msk.bf16.mxu0 %vm929_vm6, %v1221_v22 }
  0x94   :  { %1021 = vmatmul.mubr.msk.bf16.vlgmr.msra.gmra.mxu0 %vm931_vm5, %v1221_v22 }
  0x95   :  { %1069 = vmatpush3.bf16.msra.mxu0 %v1259_v9 }
  0x96   :  { %1070 = vmatprep.subr.bf16.mxu0 %v1219_v1 }
  0x99   :  { %1071 = vmatpush3.bf16.msra.mxu0 %v1262_v10 }
  0x9a   :  { %1084 = vmatprep.subr.bf16.mxu0 %v1219_v1 }
  0xd9   :  { %v283_v23 = vpop.f32.mrf.mxu1 }
  0xdb   :  { %v1034_v24 = vpop.f32.mrf.mxu1 }
  0xdd   :  { %v286_v25 = vpop.f32.mrf.mxu1 }
  0xdf   :  { %v1035_v26 = vpop.f32.mrf.mxu1 }
 0x154   :  { %v1289_v31 = vpop.f32.mrf.mxu0 }
 0x155   :  { %v211_v15 = vadd.f32 %v1289_v31, %v1293_v32 }
 0x156   :  { %v202_v33 = vpop.f32.mrf.mxu0 }
 0x157   :  { %v203_v34 = vadd.f32 %v202_v33, %v1293_v32 }
 0x158   :  { %v1311_v52 = vpop.f32.mrf.mxu0 }
 0x159   :  { %v289_v35 = vadd.f32 %v283_v23, %v203_v34 }
 0x15a   :  { %v205_v53 = vpop.f32.mrf.mxu0 }
 0x15b   :  { %v939_v36 = vmul.f32 -1.442695, %v289_v35  ;;  %v206_v54 = vadd.f32 %v205_v53, %v1293_v32 }
 0x15d   :  { %1123 = vpow2.f32 %v939_v36 }
 0x16a   :  { %v1124_v37 = vpop.eup %1123 }
 0x16b   :  { %v293_v38 = vadd.f32 1.0, %v1124_v37 }
 0x16d   :  { %1125 = vrcp.f32 %v293_v38 }
 0x17a   :  { %v1126_v39 = vpop.eup %1125 }
 0x17b   :  { %v296_v40 = vmul.f32 2.0, %v1126_v39  ;;  %v298_v44 = vmul.f32 0.0, %v1126_v39 }
 0x17d   :  { %v940_v41 = vadd.f32 -1.0, %v296_v40 }
 0x17f   :  { %300 = vrot.lane.b32.xlu0 %v940_v41, %s1216_s12 }
 0x1f1   :  { %v301_v42 = vpop.permute.xlu0 %300 }
 0x1f2   :  { %v303_v43 = vmul.f32 %v1126_v39, %v301_v42 }
 0x1f4   :  { %305 = vrot.lane.b32.xlu1 %v303_v43, %s1222_s23 }
 0x266   :  { %v306_v45 = vpop.permute.xlu1 %305 }
 0x267   :  { %v308_v46 = vadd.f32 %v306_v45, %v298_v44  ;;  %v214_v44 = vadd.f32 %v1311_v52, %v1293_v32  ;;  %v57_v52 = vld [vmem:[%s1421_s0 + $0x20] sm:$0xff] }
 0x269   :  { %1127 = vtanh.f32 %v308_v46 }
 0x276   :  { %v1128_v47 = vpop.eup %1127 }
 0x277   :  { %311 = vrot.lane.b32.xlu0 %v1128_v47, %s1216_s12 }
 0x2e9   :  { %v312_v48 = vpop.permute.xlu0 %311 }
 0x2ea   :  { %v1299_v49 = vmul.f32 %v1126_v39, %v312_v48 }
 0x2ec   :  { %v315_v50 = vpack.c.bf16 %v1299_v49, %v1299_v49 }
 0x2ee   :  { %317 = vrot.lane.b32.xlu1 %v315_v50, %s1222_s23 }
 0x360   :  { %v318_v51 = vpop.permute.xlu1 %317 }
 0x361   :  { %1041 = vmatmul.mubr.msk.bf16.vlgmr.msra.gmra.mxu1 %vm245_vm7, %v318_v51 }
 0x362   :  { %1045 = vmatpush3.bf16.msra.mxu1 %v1259_v9  ;;  %1048 = vmatprep.mubr.msk.bf16.mxu1 %vm1220_vm0, %v1219_v1 }
 0x363   :  { %1046 = vmatprep.subr.bf16.mxu1 %v1219_v1 }
 0x366   :  { %1047 = vmatpush3.bf16.msra.mxu1 %v1262_v10 }
 0x367   :  { %1052 = vmatprep.subr.bf16.mxu1 %v1219_v1 }
 0x421   :  { %v356_v55 = vpop.f32.mrf.mxu1 }
 0x422   :  { %v362_v56 = vadd.f32 %v356_v55, %v206_v54 }
 0x423   :  { %v1042_v57 = vpop.f32.mrf.mxu1 }
 0x424   :  { %v942_v58 = vmul.f32 -1.442695, %v362_v56 }
 0x425   :  { %v359_v59 = vpop.f32.mrf.mxu1 }
 0x426   :  { %1129 = vpow2.f32 %v942_v58  ;;  %v59_v59 = vld [vmem:[%s1421_s0 + $0x30] sm:$0xff] }
 0x427   :  { %v1043_v60 = vpop.f32.mrf.mxu1 }
 0x433   :  { %v1130_v61 = vpop.eup %1129 }
 0x434   :  { %v366_v62 = vadd.f32 1.0, %v1130_v61 }
 0x436   :  { %1131 = vrcp.f32 %v366_v62 }
 0x443   :  { %v1132_v63 = vpop.eup %1131 }
 0x444   :  { %v369_v0 = vmul.f32 2.0, %v1132_v63  ;;  %v371_v5 = vmul.f32 %v1132_v63, %v308_v46 }
 0x446   :  { %v943_v2 = vadd.f32 -1.0, %v369_v0  ;;  %v58_v0 = vld [vmem:[%s1421_s0 + $0x28] sm:$0xff] }
 0x448   :  { %373 = vrot.lane.b32.xlu0 %v943_v2, %s1216_s12  ;;  %v60_v2 = vld [vmem:[%s1421_s0 + $0x38] sm:$0xff]  ;;  %s1223_s0 = smov [#allocation5]  }
 0x449   :  { %s904_s4 = sshll.u32 %s1223_s0, 4  ;;  %s905_s4 = int_to_ptr.vmem [resolvable:$true] %s904_s4 }
 0x44a   :  { %s1191_s5 = scalar_lea.vmem %s905_s4, 128  ;;  %p1196_p6 = scmp.lt.s32.totalorder %s905_s4, %s905_s4 }
 0x44b   :  { %p1192_p5 = scmp.ne.s32.totalorder %s905_s4, %s1191_s5  ;;  %p1197_p7 = scmp.lt.s32.totalorder %s1191_s5, %s1191_s5 }
 0x44d   :  { %p1198_p8 = por %p1197_p7, %p1196_p6 }
 0x44f   :  { %p1199_p9 = pnand %p1198_p8, %p1192_p5 }
 0x4ba   :  { %v374_v3 = vpop.permute.xlu0 %373 }
 0x4bb   :  { %v376_v4 = vmul.f32 %v1132_v63, %v374_v3 }
 0x4bd   :  { %378 = vrot.lane.b32.xlu1 %v376_v4, %s1222_s23 }
 0x52f   :  { %v379_v6 = vpop.permute.xlu1 %378 }
 0x530   :  { %v381_v7 = vadd.f32 %v379_v6, %v371_v5 }
 0x532   :  { %1133 = vtanh.f32 %v381_v7 }
 0x53f   :  { %v1134_v8 = vpop.eup %1133 }
 0x540   :  { %384 = vrot.lane.b32.xlu0 %v1134_v8, %s1216_s12 }
 0x5b2   :  { %v385_v11 = vpop.permute.xlu0 %384 }
 0x5b3   :  { %v387_v12 = vmul.f32 %v1132_v63, %v385_v11 }
 0x5b5   :  { %v389_v13 = vpack.c.bf16 %v387_v12, %v387_v12  ;;  %v388_v39 = vmax.f32 %v1299_v49, %v387_v12 }
 0x5b7   :  { %391 = vrot.lane.b32.xlu1 %v389_v13, %s1222_s23 }
 0x629   :  { %v392_v14 = vpop.permute.xlu1 %391 }
 0x62a   :  { %1049 = vmatmul.mubr.msk.bf16.vlgmr.msra.gmra.mxu1 %vm245_vm7, %v392_v14 }
 0x62b   :  { %1053 = vmatpush3.bf16.msra.mxu1 %v1259_v9  ;;  %1056 = vmatprep.mubr.msk.bf16.mxu1 %vm1220_vm0, %v1219_v1 }
 0x62c   :  { %1054 = vmatprep.subr.bf16.mxu1 %v1219_v1 }
 0x62f   :  { %1055 = vmatpush3.bf16.msra.mxu1 %v1262_v10 }
 0x630   :  { %1060 = vmatprep.subr.bf16.mxu1 %v1219_v1 }
 0x6ea   :  { %v430_v16 = vpop.f32.mrf.mxu1 }
 0x6eb   :  { %v436_v17 = vadd.f32 %v430_v16, %v211_v15 }
 0x6ec   :  { %v1050_v18 = vpop.f32.mrf.mxu1 }
 0x6ed   :  { %v945_v20 = vmul.f32 -1.442695, %v436_v17 }
 0x6ee   :  { %v433_v21 = vpop.f32.mrf.mxu1 }
 0x6ef   :  { %1135 = vpow2.f32 %v945_v20 }
 0x6f0   :  { %v1051_v23 = vpop.f32.mrf.mxu1 }
 0x6fc   :  { %v1136_v24 = vpop.eup %1135 }
 0x6fd   :  { %v440_v25 = vadd.f32 1.0, %v1136_v24 }
 0x6ff   :  { %1137 = vrcp.f32 %v440_v25 }
 0x70c   :  { %v1138_v26 = vpop.eup %1137 }
 0x70d   :  { %v443_v28 = vmul.f32 2.0, %v1138_v26  ;;  %v445_v31 = vmul.f32 %v1138_v26, %v381_v7 }
 0x70f   :  { %v946_v29 = vadd.f32 -1.0, %v443_v28 }
 0x711   :  { %447 = vrot.lane.b32.xlu0 %v946_v29, %s1216_s12 }
 0x783   :  { %v448_v33 = vpop.permute.xlu0 %447 }
 0x784   :  { %v450_v34 = vmul.f32 %v1138_v26, %v448_v33 }
 0x786   :  { %452 = vrot.lane.b32.xlu1 %v450_v34, %s1222_s23 }
 0x7f8   :  { %v453_v35 = vpop.permute.xlu1 %452 }
 0x7f9   :  { %v455_v36 = vadd.f32 %v453_v35, %v445_v31 }
 0x7fb   :  { %1139 = vtanh.f32 %v455_v36 }
 0x808   :  { %v1140_v37 = vpop.eup %1139 }
 0x809   :  { %458 = vrot.lane.b32.xlu0 %v1140_v37, %s1216_s12 }
 0x87b   :  { %v459_v38 = vpop.permute.xlu0 %458 }
 0x87c   :  { %v461_v40 = vmul.f32 %v1138_v26, %v459_v38 }
 0x87e   :  { %v1331_v41 = vmax.f32 %v388_v39, %v461_v40  ;;  %v463_v42 = vpack.c.bf16 %v461_v40, %v461_v40 }
 0x880   :  { %465 = vrot.lane.b32.xlu1 %v463_v42, %s1222_s23 }
 0x8f2   :  { %v466_v43 = vpop.permute.xlu1 %465 }
 0x8f3   :  { %1057 = vmatmul.mubr.msk.bf16.vlgmr.msra.gmra.mxu1 %vm245_vm7, %v466_v43 }
 0x8f4   :  { %1061 = vmatpush3.bf16.msra.mxu1 %v1259_v9  ;;  %1064 = vmatprep.mubr.msk.bf16.mxu1 %vm1220_vm0, %v1219_v1 }
 0x8f5   :  { %1062 = vmatprep.subr.bf16.mxu1 %v1219_v1 }
 0x8f8   :  { %1063 = vmatpush3.bf16.msra.mxu1 %v1262_v10 }
 0x8f9   :  { %1076 = vmatprep.subr.bf16.mxu1 %v1219_v1 }
 0x9b3   :  { %v504_v45 = vpop.f32.mrf.mxu1 }
 0x9b4   :  { %v510_v46 = vadd.f32 %v504_v45, %v214_v44 }
 0x9b5   :  { %v1058_v47 = vpop.f32.mrf.mxu1 }
 0x9b6   :  { %v948_v48 = vmul.f32 -1.442695, %v510_v46 }
 0x9b7   :  { %v507_v49 = vpop.f32.mrf.mxu1 }
 0x9b8   :  { %1141 = vpow2.f32 %v948_v48 }
 0x9b9   :  { %v1059_v50 = vpop.f32.mrf.mxu1 }
 0x9c5   :  { %v1142_v51 = vpop.eup %1141 }
 0x9c6   :  { %v514_v53 = vadd.f32 1.0, %v1142_v51 }
 0x9c8   :  { %1143 = vrcp.f32 %v514_v53 }
 0x9d5   :  { %v1144_v54 = vpop.eup %1143 }
 0x9d6   :  { %v517_v55 = vmul.f32 2.0, %v1144_v54  ;;  %v519_v60 = vmul.f32 %v1144_v54, %v455_v36 }
 0x9d8   :  { %v949_v56 = vadd.f32 -1.0, %v517_v55 }
 0x9da   :  { %521 = vrot.lane.b32.xlu0 %v949_v56, %s1216_s12 }
 0xa4c   :  { %v522_v57 = vpop.permute.xlu0 %521 }
 0xa4d   :  { %v524_v58 = vmul.f32 %v1144_v54, %v522_v57 }
 0xa4f   :  { %526 = vrot.lane.b32.xlu1 %v524_v58, %s1222_s23 }
 0xa53   :  { %76 = vperm.xlu1 %1110, %v57_v52  }
 0xa57   :  { %82 = vperm.xlu1 %1110, %v59_v59  }
 0xac1   :  { %v527_v61 = vpop.permute.xlu1 %526 }
 0xac2   :  { %v529_v62 = vadd.f32 %v527_v61, %v519_v60 }
 0xac4   :  { %1145 = vtanh.f32 %v529_v62 }
 0xace   :  { %v77_v7 = vpop.permute.xlu1 %76 }
 0xacf   :  { %vm91_vm8 = vcmp.eq.s32.totalorder %v77_v7, %v1274_v19 }
 0xad1   :  { %v1146_v63 = vpop.eup %1145 }
 0xad2   :  { %532 = vrot.lane.b32.xlu0 %v1146_v63, %s1216_s12  ;;  %v83_v11 = vpop.permute.xlu1 %82 }
 0xad3   :  { %vm93_vm11 = vcmp.eq.s32.totalorder %v83_v11, %v1274_v19 }
 0xad6   :  { %79 = vperm.xlu0 %1109, %v58_v0  }
 0xada   :  { %85 = vperm.xlu0 %1109, %v60_v2  }
 0xb44   :  { %v533_v3 = vpop.permute.xlu0 %532 }
 0xb45   :  { %v535_v4 = vmul.f32 %v1144_v54, %v533_v3 }
 0xb47   :  { %v536_v5 = vmax.f32 %v1331_v41, %v535_v4  ;;  %v537_v6 = vpack.c.bf16 %v535_v4, %v535_v4 }
 0xb49   :  { %539 = vrot.lane.b32.xlu1 %v537_v6, %s1222_s23 }
 0xb51   :  { %v80_v8 = vpop.permute.xlu0 %79 }
 0xb52   :  { %vm92_vm9 = vcmp.eq.s32.totalorder %v80_v8, %v1274_v19 }
 0xb53   :  { %vm933_vm10 = vmpackc.low %vm92_vm9, %vm91_vm8 }
 0xb54   :  { %1024 = vmatprep.mubr.msk.bf16.mxu0 %vm933_vm10, %v1221_v22 }
 0xb55   :  { %v86_v12 = vpop.permute.xlu0 %85 }
 0xb56   :  { %vm94_vm12 = vcmp.eq.s32.totalorder %v86_v12, %v1274_v19 }
 0xb57   :  { %vm935_vm13 = vmpackc.low %vm94_vm12, %vm93_vm11 }
 0xb58   :  { %1025 = vmatmul.mubr.msk.bf16.gmra.mxu0 %vm935_vm13, %v1221_v22 }
 0xb59   :  { %1072 = vmatprep.mubr.msk.bf16.mxu0 %vm1220_vm0, %v1219_v1 }
 0xbbb   :  { %v540_v13 = vpop.permute.xlu1 %539 }
 0xbbc   :  { %1065 = vmatmul.mubr.msk.bf16.vlgmr.msra.gmra.mxu1 %vm245_vm7, %v540_v13 }
 0xbbd   :  { %1077 = vmatpush3.bf16.msra.mxu1 %v1259_v9  ;;  %1080 = vmatprep.mubr.msk.bf16.mxu1 %vm1220_vm0, %v1219_v1 }
 0xbbe   :  { %1078 = vmatprep.subr.bf16.mxu1 %v1219_v1 }
 0xbc1   :  { %1079 = vmatpush3.bf16.msra.mxu1 %v1262_v10 }
 0xbc2   :  { %1092 = vmatprep.subr.bf16.mxu1 %v1219_v1 }
 0xc18   :  { %v1375_v19 = vpop.f32.mrf.mxu0 }
 0xc19   :  { %v227_v2 = vadd.f32 %v1375_v19, %v1293_v32 }
 0xc1a   :  { %v218_v22 = vpop.f32.mrf.mxu0 }
 0xc1b   :  { %v219_v14 = vadd.f32 %v218_v22, %v1293_v32 }
 0xc1c   :  { %v1390_v42 = vpop.f32.mrf.mxu0 }
 0xc1e   :  { %v221_v43 = vpop.f32.mrf.mxu0 }
 0xc1f   :  { %v222_v44 = vadd.f32 %v221_v43, %v1293_v32 }
 0xc7c   :  { %v578_v15 = vpop.f32.mrf.mxu1 }
 0xc7d   :  { %v584_v16 = vadd.f32 %v578_v15, %v219_v14 }
 0xc7e   :  { %v1066_v17 = vpop.f32.mrf.mxu1 }
 0xc7f   :  { %v951_v18 = vmul.f32 -1.442695, %v584_v16 }
 0xc80   :  { %v581_v20 = vpop.f32.mrf.mxu1 }
 0xc81   :  { %1147 = vpow2.f32 %v951_v18 }
 0xc82   :  { %v1067_v21 = vpop.f32.mrf.mxu1 }
 0xc8e   :  { %v1148_v23 = vpop.eup %1147 }
 0xc8f   :  { %v588_v24 = vadd.f32 1.0, %v1148_v23 }
 0xc91   :  { %1149 = vrcp.f32 %v588_v24 }
 0xc9e   :  { %v1150_v25 = vpop.eup %1149 }
 0xc9f   :  { %v591_v26 = vmul.f32 2.0, %v1150_v25  ;;  %v593_v34 = vmul.f32 %v1150_v25, %v529_v62 }
 0xca1   :  { %v952_v28 = vadd.f32 -1.0, %v591_v26 }
 0xca3   :  { %595 = vrot.lane.b32.xlu0 %v952_v28, %s1216_s12  ;;  %v230_v28 = vadd.f32 %v1390_v42, %v1293_v32 }
 0xd15   :  { %v596_v29 = vpop.permute.xlu0 %595 }
 0xd16   :  { %v598_v33 = vmul.f32 %v1150_v25, %v596_v29 }
 0xd18   :  { %600 = vrot.lane.b32.xlu1 %v598_v33, %s1222_s23 }
 0xd8a   :  { %v601_v31 = vpop.permute.xlu1 %600 }
 0xd8b   :  { %v603_v35 = vadd.f32 %v601_v31, %v593_v34 }
 0xd8d   :  { %1151 = vtanh.f32 %v603_v35 }
 0xd9a   :  { %v1152_v36 = vpop.eup %1151 }
 0xd9b   :  { %606 = vrot.lane.b32.xlu0 %v1152_v36, %s1216_s12 }
 0xe0d   :  { %v607_v37 = vpop.permute.xlu0 %606 }
 0xe0e   :  { %v609_v38 = vmul.f32 %v1150_v25, %v607_v37 }
 0xe10   :  { %v1381_v39 = vmax.f32 %v536_v5, %v609_v38  ;;  %v611_v40 = vpack.c.bf16 %v609_v38, %v609_v38 }
 0xe12   :  { %613 = vrot.lane.b32.xlu1 %v611_v40, %s1222_s23 }
 0xe84   :  { %v614_v41 = vpop.permute.xlu1 %613 }
 0xe85   :  { %1073 = vmatmul.mubr.msk.bf16.vlgmr.msra.gmra.mxu0 %vm245_vm7, %v614_v41 }
 0xe86   :  { %1085 = vmatpush3.bf16.msra.mxu0 %v1259_v9  ;;  %1088 = vmatprep.mubr.msk.bf16.mxu0 %vm1220_vm0, %v1219_v1 }
 0xe87   :  { %1086 = vmatprep.subr.bf16.mxu0 %v1219_v1 }
 0xe8a   :  { %1087 = vmatpush3.bf16.msra.mxu0 %v1262_v10 }
 0xf45   :  { %v652_v45 = vpop.f32.mrf.mxu0 }
 0xf46   :  { %v658_v46 = vadd.f32 %v652_v45, %v222_v44 }
 0xf47   :  { %v1074_v47 = vpop.f32.mrf.mxu0 }
 0xf48   :  { %v954_v48 = vmul.f32 -1.442695, %v658_v46  ;;  %v1121_v46 = vld [vmem:[#allocation2 + $0x60] sm:$0xff]   ;;  %v1122_v47 = vld [vmem:[#allocation2 + $0x58] sm:$0xff]  }
 0xf49   :  { %v655_v49 = vpop.f32.mrf.mxu0 }
 0xf4a   :  { %1153 = vpow2.f32 %v954_v48 }
 0xf4b   :  { %v1075_v50 = vpop.f32.mrf.mxu0 }
 0xf57   :  { %v1154_v9 = vpop.eup %1153 }
 0xf58   :  { %v662_v51 = vadd.f32 1.0, %v1154_v9 }
 0xf5a   :  { %1155 = vrcp.f32 %v662_v51 }
 0xf67   :  { %v1156_v53 = vpop.eup %1155 }
 0xf68   :  { %v665_v54 = vmul.f32 2.0, %v1156_v53  ;;  %v667_v57 = vmul.f32 %v1156_v53, %v603_v35 }
 0xf6a   :  { %v955_v55 = vadd.f32 -1.0, %v665_v54  ;;  %v52_v54 = vld [vmem:[#allocation2 + $0x68] sm:$0x1] }
 0xf6c   :  { %669 = vrot.lane.b32.xlu0 %v955_v55, %s1216_s12  ;;  %v834_v55 = vunpack.c.l.bf16 %v52_v54 }
 0xfde   :  { %v670_v10 = vpop.permute.xlu0 %669 }
 0xfdf   :  { %v672_v56 = vmul.f32 %v1156_v53, %v670_v10  ;;  %v838_v10 = vrot.slane %v834_v55, %v118_v30 }
 0xfe1   :  { %674 = vrot.lane.b32.xlu1 %v672_v56, %s1222_s23 }
0x1053   :  { %v675_v58 = vpop.permute.xlu1 %674 }
0x1054   :  { %v677_v52 = vadd.f32 %v675_v58, %v667_v57 }
0x1056   :  { %1157 = vtanh.f32 %v677_v52 }
0x1063   :  { %v1158_v59 = vpop.eup %1157 }
0x1064   :  { %680 = vrot.lane.b32.xlu0 %v1158_v59, %s1216_s12 }
0x10d6   :  { %v681_v60 = vpop.permute.xlu0 %680 }
0x10d7   :  { %v683_v61 = vmul.f32 %v1156_v53, %v681_v60 }
0x10d9   :  { %v684_v62 = vmax.f32 %v1381_v39, %v683_v61  ;;  %v685_v63 = vpack.c.bf16 %v683_v61, %v683_v61 }
0x10db   :  { %687 = vrot.lane.b32.xlu1 %v685_v63, %s1222_s23 }
0x114d   :  { %v688_v0 = vpop.permute.xlu1 %687 }
0x114e   :  { %1081 = vmatmul.mubr.msk.bf16.vlgmr.msra.gmra.mxu1 %vm245_vm7, %v688_v0 }
0x114f   :  { %1096 = vmatprep.mubr.msk.bf16.mxu1 %vm1220_vm0, %v1219_v1  ;;  %1093 = vmatpush3.bf16.msra.mxu1 %v1121_v46 }
0x1150   :  { %1094 = vmatprep.subr.bf16.mxu1 %v1219_v1 }
0x1153   :  { %1095 = vmatpush3.bf16.msra.mxu1 %v1122_v47 }
0x120e   :  { %v726_v3 = vpop.f32.mrf.mxu1 }
0x120f   :  { %v732_v4 = vadd.f32 %v726_v3, %v227_v2 }
0x1210   :  { %v1082_v5 = vpop.f32.mrf.mxu1 }
0x1211   :  { %v957_v6 = vmul.f32 -1.442695, %v732_v4 }
0x1212   :  { %v729_v7 = vpop.f32.mrf.mxu1 }
0x1213   :  { %1159 = vpow2.f32 %v957_v6 }
0x1214   :  { %v1083_v8 = vpop.f32.mrf.mxu1 }
0x1220   :  { %v1160_v11 = vpop.eup %1159 }
0x1221   :  { %v736_v12 = vadd.f32 1.0, %v1160_v11 }
0x1223   :  { %1161 = vrcp.f32 %v736_v12 }
0x1230   :  { %v1162_v13 = vpop.eup %1161 }
0x1231   :  { %v739_v22 = vmul.f32 2.0, %v1162_v13  ;;  %v741_v19 = vmul.f32 %v1162_v13, %v677_v52 }
0x1233   :  { %v958_v14 = vadd.f32 -1.0, %v739_v22 }
0x1235   :  { %743 = vrot.lane.b32.xlu0 %v958_v14, %s1216_s12 }
0x12a7   :  { %v744_v15 = vpop.permute.xlu0 %743 }
0x12a8   :  { %v746_v16 = vmul.f32 %v1162_v13, %v744_v15 }
0x12aa   :  { %748 = vrot.lane.b32.xlu1 %v746_v16, %s1222_s23 }
0x131c   :  { %v749_v17 = vpop.permute.xlu1 %748 }
0x131d   :  { %v751_v18 = vadd.f32 %v749_v17, %v741_v19 }
0x131f   :  { %1163 = vtanh.f32 %v751_v18 }
0x132c   :  { %v1164_v20 = vpop.eup %1163 }
0x132d   :  { %754 = vrot.lane.b32.xlu0 %v1164_v20, %s1216_s12 }
0x139f   :  { %v755_v21 = vpop.permute.xlu0 %754 }
0x13a0   :  { %v757_v23 = vmul.f32 %v1162_v13, %v755_v21 }
0x13a2   :  { %v758_v24 = vmax.f32 %v684_v62, %v757_v23  ;;  %v759_v25 = vpack.c.bf16 %v757_v23, %v757_v23 }
0x13a4   :  { %761 = vrot.lane.b32.xlu1 %v759_v25, %s1222_s23 }
0x1416   :  { %v762_v26 = vpop.permute.xlu1 %761 }
0x1417   :  { %1089 = vmatmul.mubr.msk.bf16.vlgmr.msra.gmra.mxu0 %vm245_vm7, %v762_v26 }
0x14d7   :  { %v800_v29 = vpop.f32.mrf.mxu0 }
0x14d8   :  { %v806_v33 = vadd.f32 %v800_v29, %v230_v28 }
0x14d9   :  { %v1090_v34 = vpop.f32.mrf.mxu0 }
0x14da   :  { %v960_v31 = vmul.f32 -1.442695, %v806_v33 }
0x14db   :  { %v803_v35 = vpop.f32.mrf.mxu0 }
0x14dc   :  { %1165 = vpow2.f32 %v960_v31 }
0x14dd   :  { %v1091_v36 = vpop.f32.mrf.mxu0 }
0x14e9   :  { %v1166_v37 = vpop.eup %1165 }
0x14ea   :  { %v810_v38 = vadd.f32 1.0, %v1166_v37 }
0x14ec   :  { %1167 = vrcp.f32 %v810_v38 }
0x14f9   :  { %v1168_v39 = vpop.eup %1167 }
0x14fa   :  { %v813_v40 = vmul.f32 2.0, %v1168_v39  ;;  %v815_v32 = vmul.f32 %v1168_v39, %v751_v18 }
0x14fc   :  { %v961_v41 = vadd.f32 -1.0, %v813_v40 }
0x14fe   :  { %817 = vrot.lane.b32.xlu0 %v961_v41, %s1216_s12 }
0x1570   :  { %v818_v43 = vpop.permute.xlu0 %817 }
0x1571   :  { %v820_v44 = vmul.f32 %v1168_v39, %v818_v43 }
0x1573   :  { %822 = vrot.lane.b32.xlu1 %v820_v44, %s1222_s23 }
0x15e5   :  { %v823_v42 = vpop.permute.xlu1 %822 }
0x15e6   :  { %v825_v45 = vadd.f32 %v823_v42, %v815_v32 }
0x15e8   :  { %1169 = vtanh.f32 %v825_v45 }
0x15f5   :  { %v1170_v48 = vpop.eup %1169 }
0x15f6   :  { %828 = vrot.lane.b32.xlu0 %v1170_v48, %s1216_s12 }
0x1668   :  { %v829_v49 = vpop.permute.xlu0 %828 }
0x1669   :  { %v831_v50 = vmul.f32 %v1168_v39, %v829_v49 }
0x166b   :  { %v832_v9 = vmax.f32 %v758_v24, %v831_v50 }
0x166d   :  { %v833_v51 = vpack.c.bf16 %v832_v9, %v832_v9 }
0x166f   :  { %840 = vrot.lane.b32.xlu1 %v833_v51, %s1222_s23 }
0x16e1   :  { %v841_v53 = vpop.permute.xlu1 %840 }
0x16e2   :  { %1097 = vmatmul.mubr.msk.bf16.vlgmr.msra.gmra.mxu1 %vm245_vm7, %v841_v53 }
0x17a2   :  { %v891_v1 = vpop.f32.mrf.mxu1 }
0x17a3   :  { %v892_v56 = vadd.f32 %v891_v1, %v838_v10 }
0x17a4   :  { %v1098_v57 = vpop.f32.mrf.mxu1 }
0x17a5   :  { %897 = vst [vmem:[#allocation5] sm:$0xff] %v892_v56 }
0x17a6   :  { %v894_v58 = vpop.f32.mrf.mxu1 }
0x17a7   :  { %1202 = shalt.err (!%p1199_p9)
}
0x17a8   :  { %907 = dma.vmem_to_hbm [thread:$0]  %s905_s4, 128, %s1423_s2, [#allocation4]   ;;  %v1099_v27 = vpop.f32.mrf.mxu1 }
0x17a9   :  { %1213 = dma.done.wait [#allocation4], 128  }
0x17aa   :  { %1214 = vsyncadd [#allocation4], 4294967168 }
0x17ab   :  { %911 = vsyncpa [#allocation3], 1 }
0x17ac   :  { %912 = vsyncpa [#allocation4], 1 }

</bundles_post_ra>
